<compile_context>
chip_gen: v6e
topology: v6e:2x2x1
jax: 0.10.0
libtpu: 0.0.40
codegen_flags: <defaults>
</compile_context>

<pallas_src>
import math
import functools

import jax
import jax.numpy as jnp
from jax.experimental import pallas as pl
from jax.experimental.pallas import tpu as pltpu


def make_positional_encoding_table(d_model: int, max_len: int = 5000) -> jnp.ndarray:
    """Deterministic sinusoidal table, shape (max_len, 1, d_model), float32."""
    position = jnp.arange(max_len, dtype=jnp.float32)[:, None]                  # (L, 1)
    div_term = jnp.exp(
        jnp.arange(0, d_model, 2, dtype=jnp.float32) * (-math.log(10000.0) / d_model)
    )                                                                            # (D/2,)
    angles = position * div_term                                                 # (L, D/2)
    pe = jnp.zeros((max_len, 1, d_model), dtype=jnp.float32)
    pe = pe.at[:, 0, 0::2].set(jnp.sin(angles))
    pe = pe.at[:, 0, 1::2].set(jnp.cos(angles))
    return pe


# ----------------------------- kernels ------------------------------------ #

def _add_pe_kernel(x_ref, pe_ref, o_ref):
    # pe_ref broadcasts against x_ref ((TS,1,D) vs (TS,B,D), or same 2D shape).
    o_ref[...] = (x_ref[...] + pe_ref[...]).astype(o_ref.dtype)


def _add_pe_dropout_kernel(x_ref, pe_ref, m_ref, o_ref):
    # m_ref is a pre-scaled keep mask: keep/(1-p) or 0, already in x.dtype.
    o_ref[...] = ((x_ref[...] + pe_ref[...]) * m_ref[...]).astype(o_ref.dtype)


# ----------------------------- wrapper ------------------------------------ #

_TARGET_TILE_BYTES = 1 << 20  # ~1 MiB per x tile; 2x-buffered totals stay small.


def positional_encoding_forward(x, pe_table, *, p: float = 0.1,
                                training: bool = True, rng_key=None):
    """x: (seq_len, batch, d_model). Returns x + pe[:seq_len] with dropout."""
    S, B, D = x.shape
    dtype = x.dtype
    itemsize = jnp.dtype(dtype).itemsize

    # pe is a constant buffer: cast once to the model dtype (halves DMA if bf16).
    pe_slice = pe_table[:S].astype(dtype)                       # (S, 1, D)

    use_dropout = bool(training) and p > 0.0
    if use_dropout:
        if rng_key is None:
            rng_key = jax.random.PRNGKey(0)
        keep = jax.random.bernoulli(rng_key, 1.0 - p, (S, B, D))
        scale = jnp.asarray(1.0 / (1.0 - p), dtype=dtype)
        mask3d = keep.astype(dtype) * scale                     # (S, B, D)
    else:
        mask3d = None

    lane_dense = (D % 128 == 0)

    # Tile size over seq_len: ~1 MiB of x per block.
    row_bytes = max(B * D * itemsize, 1)
    TS = max(1, min(S, _TARGET_TILE_BYTES // row_bytes))

    if lane_dense:
        # 3D tiling: (TS, B, D) blocks; pe broadcast over batch in-register.
        x_in = x
        pe_in = pe_slice
        x_spec = pl.BlockSpec((TS, B, D), lambda i: (i, 0, 0))
        pe_spec = pl.BlockSpec((TS, 1, D), lambda i: (i, 0, 0))
        mask_in = mask3d
        mask_spec = x_spec
        out_shape_2d = (S, B, D)
    else:
        # Small / odd d_model: fold batch into the lane axis for denser vregs
        # and unmasked stores.  pe is pre-broadcast (extra traffic only matters
        # for small D, where everything is tiny anyway).
        W = B * D
        if TS < S:
            TS = max(8, (TS // 8) * 8)        # sublane-aligned partial blocks
            TS = min(TS, S)
        x_in = x.reshape(S, W)
        pe_in = jnp.broadcast_to(pe_slice, (S, B, D)).reshape(S, W)
        x_spec = pl.BlockSpec((TS, W), lambda i: (i, 0))
        pe_spec = x_spec
        mask_in = None if mask3d is None else mask3d.reshape(S, W)
        mask_spec = x_spec
        out_shape_2d = (S, W)

    grid = (pl.cdiv(S, TS),)

    if use_dropout:
        kernel = _add_pe_dropout_kernel
        operands = (x_in, pe_in, mask_in)
        in_specs = [x_spec, pe_spec, mask_spec]
    else:
        kernel = _add_pe_kernel
        operands = (x_in, pe_in)
        in_specs = [x_spec, pe_spec]

    out = pl.pallas_call(
        kernel,
        out_shape=jax.ShapeDtypeStruct(out_shape_2d, dtype),
        grid=grid,
        in_specs=in_specs,
        out_specs=x_spec,
        compiler_params=pltpu.CompilerParams(
            dimension_semantics=("parallel",),   # seq tiles independent -> megacore
        ),
    )(*operands)

    return out.reshape(S, B, D)


# ------------------------------- demo -------------------------------------- #

if __name__ == "__main__":
    d_model = 32
    seq_len = 8
    batch = 2
    dropout_p = 0.1

    key = jax.random.PRNGKey(0)
    kx, kd = jax.random.split(key)
    x = jax.random.normal(kx, (seq_len, batch, d_model), dtype=jnp.float32)

    pe_table = make_positional_encoding_table(d_model, max_len=5000)

    # Pure-JAX reference for the deterministic part.
    y_ref = x + pe_table[:seq_len].astype(x.dtype)

    # Eval-mode path (dropout = identity).
    y_eval = positional_encoding_forward(x, pe_table, p=dropout_p, training=False)
    y_eval = jax.block_until_ready(y_eval)
    assert y_eval.shape == (seq_len, batch, d_model)
    assert jnp.allclose(y_eval, y_ref, atol=1e-6, rtol=1e-6), "eval mismatch vs reference"

    # Train-mode path: check against the same (reproducible) mask.
    y_train = positional_encoding_forward(x, pe_table, p=dropout_p, training=True,
                                          rng_key=kd)
    y_train = jax.block_until_ready(y_train)
    assert y_train.shape == (seq_len, batch, d_model)
    keep = jax.random.bernoulli(kd, 1.0 - dropout_p, (seq_len, batch, d_model))
    expected = jnp.where(keep, y_ref * jnp.float32(1.0 / (1.0 - dropout_p)),
                         jnp.float32(0.0))
    assert jnp.allclose(y_train, expected, atol=1e-5, rtol=1e-5), "train mismatch vs reference"

    print("KERNEL_OK")
</pallas_src>

<mosaic_0001>
module attributes {stable_mosaic.version = 11 : i64} {
  func.func @_add_pe_kernel(%arg0: i32, %arg1: memref<8x64xf32, #tpu.memory_space<vmem>>, %arg2: memref<8x64xf32, #tpu.memory_space<vmem>>, %arg3: memref<8x64xf32, #tpu.memory_space<vmem>>) attributes {dimension_semantics = [#tpu.dimension_semantics<parallel>], iteration_bounds = array<i64: 1>, scalar_prefetch = 0 : i64, scratch_operands = 0 : i64, tpu.core_type = #tpu.core_type<tc>, window_params = [{transform_indices = @transform_0, window_bounds = array<i64: 8, 64>}, {transform_indices = @transform_1, window_bounds = array<i64: 8, 64>}, {transform_indices = @transform_2, window_bounds = array<i64: 8, 64>}]} {
    %c0 = arith.constant 0 : index
    %c0_0 = arith.constant 0 : index
    %0 = vector.load %arg1[%c0, %c0_0] : memref<8x64xf32, #tpu.memory_space<vmem>>, vector<8x64xf32>
    %c0_1 = arith.constant 0 : index
    %c0_2 = arith.constant 0 : index
    %1 = vector.load %arg2[%c0_1, %c0_2] : memref<8x64xf32, #tpu.memory_space<vmem>>, vector<8x64xf32>
    %2 = arith.addf %0, %1 : vector<8x64xf32>
    %c0_3 = arith.constant 0 : index
    %c0_4 = arith.constant 0 : index
    %3 = vector.load %arg3[%c0_3, %c0_4] : memref<8x64xf32, #tpu.memory_space<vmem>>, vector<8x64xf32>
    tpu.vector_store %arg3[%c0_3, %c0_4], %2 {strides = array<i32>} : memref<8x64xf32, #tpu.memory_space<vmem>>, vector<8x64xf32>,
    return
  }
  func.func @transform_0(%arg0: i32) -> (i32, i32) {
    %c0_i32 = arith.constant 0 : i32
    %c0_i32_0 = arith.constant 0 : i32
    return %arg0, %c0_i32 : i32, i32
  }
  func.func @transform_1(%arg0: i32) -> (i32, i32) {
    %c0_i32 = arith.constant 0 : i32
    %c0_i32_0 = arith.constant 0 : i32
    return %arg0, %c0_i32 : i32, i32
  }
  func.func @transform_2(%arg0: i32) -> (i32, i32) {
    %c0_i32 = arith.constant 0 : i32
    %c0_i32_0 = arith.constant 0 : i32
    return %arg0, %c0_i32 : i32, i32
  }
}

</mosaic_0001>

<bundles_post_ra>
// kernel: tpu_custom_call.1
= control target key start
LH: loop header
LB: loop body
LE: loop exit
PB: predicated region body
PF: predicated region fallthrough
CT: control target
= control target key end

     0   :  { %7 = vsyncpa [#allocation3], 0  ;;  %s153_s0 = inlined_call_operand.hbm [shape: f32[8,64], index: 0, kind: input, shape index: {}]   ;;  %s154_s1 = inlined_call_operand.hbm [shape: f32[8,64], index: 1, kind: input, shape index: {}]   ;;  %s155_s2 = inlined_call_operand.hbm [shape: f32[8,64], index: 2, kind: output, shape index: {}]  }
   0x1   :  { %8 = vsyncpa [#allocation6], 0 }
   0x2   :  { %9 = vsyncpa [#allocation4], 0  ;;  %s126_s9 = smov [#allocation2]   ;;  %s127_s11 = smov [#allocation5]  }
   0x3   :  { %s16_s10 = sshll.u32 %s126_s9, 4  ;;  %s26_s12 = sshll.u32 %s127_s11, 4  ;;  %s17_s10 = int_to_ptr.vmem [resolvable:$true] %s16_s10  ;;  %s27_s12 = int_to_ptr.vmem [resolvable:$true] %s26_s12 }
   0x4   :  { %s68_s13 = scalar_lea.vmem %s17_s10, 128  ;;  %p73_p1 = scmp.lt.s32.totalorder %s17_s10, %s17_s10 }
   0x5   :  { %p69_p0 = scmp.ne.s32.totalorder %s17_s10, %s68_s13  ;;  %p74_p2 = scmp.lt.s32.totalorder %s68_s13, %s68_s13 }
   0x7   :  { %p75_p3 = por %p74_p2, %p73_p1 }
   0x9   :  { %p76_p4 = pnand %p75_p3, %p69_p0 }
   0xb   :  { %79 = shalt.err (!%p76_p4)
}
   0xc   :  { %19 = dma.hbm_to_vmem [thread:$0]  %s153_s0, 128, %s17_s10, [#allocation3]  }
   0xd   :  { %s88_s16 = scalar_lea.vmem %s27_s12, 128  ;;  %p93_p6 = scmp.lt.s32.totalorder %s27_s12, %s27_s12 }
   0xe   :  { %p89_p5 = scmp.ne.s32.totalorder %s27_s12, %s88_s16  ;;  %p94_p7 = scmp.lt.s32.totalorder %s88_s16, %s88_s16 }
  0x10   :  { %p95_p8 = por %p94_p7, %p93_p6 }
  0x12   :  { %p96_p9 = pnand %p95_p8, %p89_p5 }
  0x14   :  { %99 = shalt.err (!%p96_p9)
}
  0x15   :  { %29 = dma.hbm_to_vmem [thread:$0]  %s154_s1, 128, %s27_s12, [#allocation6]  }
  0x16   :  { %120 = dma.done.wait [#allocation3], 128  }
  0x17   :  { %121 = vsyncadd [#allocation3], 4294967168 }
  0x18   :  { %122 = dma.done.wait [#allocation6], 128  }
  0x19   :  { %123 = vsyncadd [#allocation6], 4294967168  ;;  %s128_s19 = smov [#allocation7]   ;;  %v36_v0 = vld [vmem:[#allocation2] sm:$0xff]  ;;  %v37_v1 = vld [vmem:[#allocation5] sm:$0xff]  ;;  %vm39_vm0 = vcmask 523264  }
  0x1a   :  { %s47_s20 = sshll.u32 %s128_s19, 4  ;;  %v38_v2 = vadd.f32 %v37_v1, %v36_v0  ;;  %s48_s20 = int_to_ptr.vmem [resolvable:$true] %s47_s20 }
  0x1b   :  { %s100_s0 = scalar_lea.vmem %s48_s20, 128  ;;  %p105_p11 = scmp.lt.s32.totalorder %s48_s20, %s48_s20 }
  0x1c   :  { %40 = vst.msk [vmem:[#allocation7] sm:$0xff] %vm39_vm0, %v38_v2  ;;  %p101_p10 = scmp.ne.s32.totalorder %s48_s20, %s100_s0  ;;  %p106_p12 = scmp.lt.s32.totalorder %s100_s0, %s100_s0 }
  0x1e   :  { %p107_p13 = por %p106_p12, %p105_p11 }
  0x20   :  { %p108_p0 = pnand %p107_p13, %p101_p10 }
  0x22   :  { %111 = shalt.err (!%p108_p0)
}
  0x23   :  { %50 = dma.vmem_to_hbm [thread:$0]  %s48_s20, 128, %s155_s2, [#allocation4]  }
  0x24   :  { %124 = dma.done.wait [#allocation4], 128  }
  0x25   :  { %125 = vsyncadd [#allocation4], 4294967168 }
  0x26   :  { %54 = vsyncpa [#allocation3], 1 }
  0x27   :  { %55 = vsyncpa [#allocation6], 1 }
  0x28   :  { %56 = vsyncpa [#allocation4], 1 }

</bundles_post_ra>
